<compile_context>
chip_gen: v5e
topology: v5e:2x2
jax: 0.10.0
libtpu: 0.0.40
codegen_flags: <defaults>
</compile_context>

<pallas_src>
import functools

import jax
import jax.numpy as jnp
from jax.experimental import pallas as pl
from jax.experimental.pallas import tpu as pltpu


# ----------------------------------------------------------------------------
# Fused segmentation kernel. One grid point = (batch b, pixel tile n):
#   pe_T = W_pix^T @ x_tile + b_pix      [D, TILE_N]   (tiny-K MXU matmul)
#   S    = Qfeat  @ pe_T                 [Q, TILE_N]   (MXU, lane-dense)
#   M    = sigmoid(S)
#   seg  = P^T    @ M                    [C, TILE_N]   (MXU, lane-dense)
# P = softmax(class_logits) is precomputed in the wrapper.
# All intermediates keep TILE_N on the lane axis; no relayouts.
# ----------------------------------------------------------------------------
def _seg_kernel(x_ref, wt_ref, b_ref, qf_ref, cp_ref, o_ref):
    x = x_ref[0]                       # [Cin, TILE_N]  f32 (lane-dense)
    wt = wt_ref[...]                   # [D, Cin]
    b = b_ref[...]                     # [D, 1]
    qf = qf_ref[0]                     # [Q, D]
    p = cp_ref[0]                      # [Q, C] probabilities

    # Pixel embedding (transposed): contract the tiny Cin axis on the MXU,
    # result lands directly as lane-dense [D, TILE_N].
    pe_t = jax.lax.dot_general(
        wt, x, (((1,), (0,)), ((), ())),
        preferred_element_type=jnp.float32) + b                # [D, TILE_N]

    # Mask logits [Q, TILE_N] (contract over D).
    s = jax.lax.dot_general(
        qf, pe_t, (((1,), (0,)), ((), ())),
        preferred_element_type=jnp.float32)
    m = jax.nn.sigmoid(s)

    # Segmentation tile [C, TILE_N] == sum_q p[q, c] * m[q, n].
    seg = jax.lax.dot_general(
        p, m, (((0,), (0,)), ((), ())),
        preferred_element_type=jnp.float32)
    o_ref[0] = seg.astype(o_ref.dtype)


def segmentation_pallas(x_cn, w_pix, b_pix, query_feat, class_probs,
                        tile_n_target=16384):
    """x_cn: [B, Cin, N] (pixel_values flattened, channels-major — no transpose),
    w_pix: [Cin, D], b_pix: [D], query_feat: [B, Q, D], class_probs: [B, Q, C]
    -> segmentation [B, C, N]."""
    B, Cin, N = x_cn.shape
    D = w_pix.shape[1]
    Q = query_feat.shape[1]
    C = class_probs.shape[2]

    # Lane-dense pixel tile. No input padding / output slicing:
    #  - small N: a single full-extent tile (always a legal block shape);
    #  - large N: TILE_N multiple of 128, grid = cdiv(N, TILE_N); the partial
    #    last block is masked on write by Pallas (garbage input columns only
    #    produce garbage in out-of-bounds output columns, which are dropped).
    if N <= tile_n_target:
        tile_n = N
    else:
        tile_n = tile_n_target
    n_tiles = pl.cdiv(N, tile_n)

    # Pre-transpose the tiny weight so the kernel needs no relayout.
    w_t = jnp.transpose(w_pix)            # [D, Cin]
    b_col = b_pix.reshape(D, 1)           # [D, 1]

    # Scoped-VMEM estimate from (8,128)-padded, double-buffered tiles
    # + parameters + in-kernel intermediates. Capped at 48 MiB (< v7x's
    # 64 MiB physical VMEM, leaving compiler headroom).
    def _padded(r, c):
        return (pl.cdiv(r, 8) * 8) * (pl.cdiv(c, 128) * 128) * 4
    tile_bytes = (2 * (_padded(Cin, tile_n) + _padded(C, tile_n)
                       + _padded(Q, D) + _padded(Q, C))
                  + _padded(D, Cin) + _padded(D, 1)
                  + _padded(D, tile_n) + 3 * _padded(Q, tile_n)
                  + _padded(C, tile_n))
    vmem_limit = int(min(48 << 20, max(16 << 20, 2 * tile_bytes)))

    seg = pl.pallas_call(
        _seg_kernel,
        out_shape=jax.ShapeDtypeStruct((B, C, N), jnp.float32),
        grid_spec=pltpu.PrefetchScalarGridSpec(
            num_scalar_prefetch=0,
            grid=(B, n_tiles),
            in_specs=[
                pl.BlockSpec((1, Cin, tile_n), lambda b, n: (b, 0, n)),
                pl.BlockSpec((D, Cin), lambda b, n: (0, 0)),
                pl.BlockSpec((D, 1), lambda b, n: (0, 0)),
                pl.BlockSpec((1, Q, D), lambda b, n: (b, 0, 0)),
                pl.BlockSpec((1, Q, C), lambda b, n: (b, 0, 0)),
            ],
            out_specs=pl.BlockSpec((1, C, tile_n), lambda b, n: (b, 0, n)),
        ),
        compiler_params=pltpu.CompilerParams(
            dimension_semantics=("parallel", "parallel"),
            vmem_limit_bytes=vmem_limit,
        ),
    )(x_cn, w_t, b_col, query_feat, class_probs)

    return seg


# ----------------------------------------------------------------------------
# Model wrapper
# ----------------------------------------------------------------------------
class Mask2FormerPallas:
    """Synthetic Mask2Former with deterministic parameters."""

    def __init__(self, num_classes, in_channels=4, hidden_dim=32, num_queries=8,
                 seed=0):
        self.num_classes = num_classes
        self.in_channels = in_channels
        self.hidden_dim = hidden_dim
        self.num_queries = num_queries

        k = jax.random.PRNGKey(seed)
        k1, k2, k3, k4, k5 = jax.random.split(k, 5)
        s = 0.1
        # pixel embedder (1x1 conv)
        self.w_pix = s * jax.random.normal(k1, (in_channels, hidden_dim), jnp.float32)
        self.b_pix = s * jax.random.normal(k2, (hidden_dim,), jnp.float32)
        # learned query embeddings
        self.query_embed = s * jax.random.normal(k3, (num_queries, hidden_dim), jnp.float32)
        # class head
        self.w_cls = s * jax.random.normal(k4, (hidden_dim, num_classes), jnp.float32)
        self.b_cls = s * jax.random.normal(k5, (num_classes,), jnp.float32)

    @functools.partial(jax.jit, static_argnums=0)
    def __call__(self, pixel_values):
        """pixel_values NCHW [B, Cin, H, W] -> segmentation NCHW [B, C, H, W]."""
        B, Cin, H, W = pixel_values.shape
        N = H * W

        # Channels-major pixel tokens [B, Cin, N]: pure reshape, no transpose,
        # no extra HBM layout of the input.
        x_cn = pixel_values.reshape(B, Cin, N)

        # Pooled image context straight from NCHW (the pixel embedder is
        # linear, so mean_n(x @ W + b) == mean_n(x) @ W + b).
        pooled = jnp.mean(pixel_values, axis=(2, 3)) @ self.w_pix + self.b_pix  # [B, D]
        query_feat = self.query_embed[None, :, :] + pooled[:, None, :]          # [B, Q, D]

        # Class probabilities (tiny), softmax done once here (not per N-tile).
        class_logits = (jnp.einsum("bqd,dc->bqc", query_feat, self.w_cls)
                        + self.b_cls[None, None, :])                            # [B, Q, C]
        class_probs = jax.nn.softmax(class_logits, axis=-1)

        # Fused pixel-embed + sigmoid(mask) x class-prob accumulation (Pallas).
        seg = segmentation_pallas(x_cn, self.w_pix, self.b_pix,
                                  query_feat, class_probs)                      # [B, C, N]
        return seg.reshape(B, self.num_classes, H, W)

    def reference(self, pixel_values):
        """Pure-JAX reference mirroring the PyTorch forward semantics."""
        B, Cin, H, W = pixel_values.shape
        N = H * W
        x_tokens = jnp.transpose(pixel_values, (0, 2, 3, 1)).reshape(B, N, Cin)
        pixel_embed = x_tokens @ self.w_pix + self.b_pix                   # [B, N, D]
        pooled = jnp.mean(x_tokens, axis=1) @ self.w_pix + self.b_pix
        query_feat = self.query_embed[None] + pooled[:, None, :]
        class_logits = jnp.einsum("bqd,dc->bqc", query_feat, self.w_cls) + self.b_cls
        mask_logits = jnp.einsum("bqd,bnd->bqn", query_feat, pixel_embed)
        masks = jax.nn.sigmoid(mask_logits)                   # [B, Q, N]
        classes = jax.nn.softmax(class_logits, axis=-1)       # [B, Q, C]
        # PyTorch loop: segmentation += mask_i * class_i over queries
        seg = jnp.einsum("bqn,bqc->bcn", masks, classes)
        return seg.reshape(B, self.num_classes, H, W)

    def get_model_name(self):
        return "Mask2Former"


if __name__ == "__main__":
    B, Cin, H, W = 2, 4, 16, 16
    num_classes = 4

    key = jax.random.PRNGKey(0)
    x = jax.random.normal(key, (B, Cin, H, W), jnp.float32)

    model = Mask2FormerPallas(num_classes=num_classes, in_channels=Cin,
                              hidden_dim=32, num_queries=8, seed=0)

    out = model(x)
    out = jax.block_until_ready(out)

    assert out.shape == (B, num_classes, H, W), out.shape
    ref = model.reference(x)
    assert jnp.allclose(out, ref, atol=1e-4, rtol=1e-4), (
        float(jnp.max(jnp.abs(out - ref))))

    print("KERNEL_OK")
</pallas_src>

<mosaic_0001>
module attributes {stable_mosaic.version = 11 : i64} {
  func.func @_seg_kernel(%arg0: i32, %arg1: i32, %arg2: memref<1x4x256xf32, #tpu.memory_space<vmem>>, %arg3: memref<32x4xf32, #tpu.memory_space<vmem>>, %arg4: memref<32x1xf32, #tpu.memory_space<vmem>>, %arg5: memref<1x8x32xf32, #tpu.memory_space<vmem>>, %arg6: memref<1x8x4xf32, #tpu.memory_space<vmem>>, %arg7: memref<1x4x256xf32, #tpu.memory_space<vmem>>) attributes {dimension_semantics = [#tpu.dimension_semantics<parallel>, #tpu.dimension_semantics<parallel>], iteration_bounds = array<i64: 2, 1>, scalar_prefetch = 0 : i64, scratch_operands = 0 : i64, tpu.core_type = #tpu.core_type<tc>, window_params = [{transform_indices = @transform_0, window_bounds = array<i64: 1, 4, 256>}, {pipeline_mode = #tpu.pipeline_mode<synchronous>, transform_indices = @transform_1, window_bounds = array<i64: 32, 4>}, {pipeline_mode = #tpu.pipeline_mode<synchronous>, transform_indices = @transform_2, window_bounds = array<i64: 32, 1>}, {transform_indices = @transform_3, window_bounds = array<i64: 1, 8, 32>}, {transform_indices = @transform_4, window_bounds = array<i64: 1, 8, 4>}, {transform_indices = @transform_5, window_bounds = array<i64: 1, 4, 256>}]} {
    %c0 = arith.constant 0 : index
    %c0_0 = arith.constant 0 : index
    %c0_1 = arith.constant 0 : index
    %0 = vector.load %arg2[%c0, %c0_0, %c0_1] : memref<1x4x256xf32, #tpu.memory_space<vmem>>, vector<1x4x256xf32>
    %1 = vector.shape_cast %0 : vector<1x4x256xf32> to vector<4x256xf32>
    %c0_2 = arith.constant 0 : index
    %c0_3 = arith.constant 0 : index
    %2 = vector.load %arg3[%c0_2, %c0_3] : memref<32x4xf32, #tpu.memory_space<vmem>>, vector<32x4xf32>
    %c0_4 = arith.constant 0 : index
    %c0_5 = arith.constant 0 : index
    %3 = vector.load %arg4[%c0_4, %c0_5] : memref<32x1xf32, #tpu.memory_space<vmem>>, vector<32x1xf32>
    %c0_6 = arith.constant 0 : index
    %c0_7 = arith.constant 0 : index
    %c0_8 = arith.constant 0 : index
    %4 = vector.load %arg5[%c0_6, %c0_7, %c0_8] : memref<1x8x32xf32, #tpu.memory_space<vmem>>, vector<1x8x32xf32>
    %5 = vector.shape_cast %4 : vector<1x8x32xf32> to vector<8x32xf32>
    %c0_9 = arith.constant 0 : index
    %c0_10 = arith.constant 0 : index
    %c0_11 = arith.constant 0 : index
    %6 = vector.load %arg6[%c0_9, %c0_10, %c0_11] : memref<1x8x4xf32, #tpu.memory_space<vmem>>, vector<1x8x4xf32>
    %7 = vector.shape_cast %6 : vector<1x8x4xf32> to vector<8x4xf32>
    %cst = arith.constant dense<0.000000e+00> : vector<32x256xf32>
    %8 = tpu.matmul %2, %1, %cst {dimension_numbers = #tpu.dot_dimension_numbers<[1], [0], [0], [1], [0, 0, 1, 1], [], []>} : vector<32x4xf32>, vector<4x256xf32>, vector<32x256xf32> -> vector<32x256xf32>
    %9 = vector.broadcast %3 : vector<32x1xf32> to vector<32x256xf32>
    %10 = arith.addf %8, %9 : vector<32x256xf32>
    %cst_12 = arith.constant dense<0.000000e+00> : vector<8x256xf32>
    %11 = tpu.matmul %5, %10, %cst_12 {dimension_numbers = #tpu.dot_dimension_numbers<[1], [0], [0], [1], [0, 0, 1, 1], [], []>} : vector<8x32xf32>, vector<32x256xf32>, vector<8x256xf32> -> vector<8x256xf32>
    %12 = arith.negf %11 : vector<8x256xf32>
    %13 = math.exp %12 : vector<8x256xf32>
    %cst_13 = arith.constant 1.000000e+00 : f32
    %14 = vector.broadcast %cst_13 : f32 to vector<8x256xf32>
    %15 = arith.addf %14, %13 : vector<8x256xf32>
    %16 = arith.divf %14, %15 : vector<8x256xf32>
    %cst_14 = arith.constant dense<0.000000e+00> : vector<4x256xf32>
    %17 = tpu.matmul %7, %16, %cst_14 {dimension_numbers = #tpu.dot_dimension_numbers<[0], [0], [1], [1], [0, 1, 1, 1], [], []>} : vector<8x4xf32>, vector<8x256xf32>, vector<4x256xf32> -> vector<4x256xf32>
    %c0_15 = arith.constant 0 : index
    %c0_16 = arith.constant 0 : index
    %c0_17 = arith.constant 0 : index
    %18 = vector.load %arg7[%c0_15, %c0_16, %c0_17] : memref<1x4x256xf32, #tpu.memory_space<vmem>>, vector<1x4x256xf32>
    %19 = vector.shape_cast %18 : vector<1x4x256xf32> to vector<4x256xf32>
    %20 = vector.shape_cast %17 : vector<4x256xf32> to vector<1x4x256xf32>
    tpu.vector_store %arg7[%c0_15, %c0_16, %c0_17], %20 {strides = array<i32>} : memref<1x4x256xf32, #tpu.memory_space<vmem>>, vector<1x4x256xf32>,
    return
  }
  func.func @transform_0(%arg0: i32, %arg1: i32) -> (i32, i32, i32) {
    %c0_i32 = arith.constant 0 : i32
    %c0_i32_0 = arith.constant 0 : i32
    return %arg0, %c0_i32, %arg1 : i32, i32, i32
  }
  func.func @transform_1(%arg0: i32, %arg1: i32) -> (i32, i32) {
    %c0_i32 = arith.constant 0 : i32
    %c0_i32_0 = arith.constant 0 : i32
    %c0_i32_1 = arith.constant 0 : i32
    return %c0_i32, %c0_i32_0 : i32, i32
  }
  func.func @transform_2(%arg0: i32, %arg1: i32) -> (i32, i32) {
    %c0_i32 = arith.constant 0 : i32
    %c0_i32_0 = arith.constant 0 : i32
    %c0_i32_1 = arith.constant 0 : i32
    return %c0_i32, %c0_i32_0 : i32, i32
  }
  func.func @transform_3(%arg0: i32, %arg1: i32) -> (i32, i32, i32) {
    %c0_i32 = arith.constant 0 : i32
    %c0_i32_0 = arith.constant 0 : i32
    %c0_i32_1 = arith.constant 0 : i32
    return %arg0, %c0_i32, %c0_i32_0 : i32, i32, i32
  }
  func.func @transform_4(%arg0: i32, %arg1: i32) -> (i32, i32, i32) {
    %c0_i32 = arith.constant 0 : i32
    %c0_i32_0 = arith.constant 0 : i32
    %c0_i32_1 = arith.constant 0 : i32
    return %arg0, %c0_i32, %c0_i32_0 : i32, i32, i32
  }
  func.func @transform_5(%arg0: i32, %arg1: i32) -> (i32, i32, i32) {
    %c0_i32 = arith.constant 0 : i32
    %c0_i32_0 = arith.constant 0 : i32
    return %arg0, %c0_i32, %arg1 : i32, i32, i32
  }
}

</mosaic_0001>

<bundles_post_ra>
// kernel: a_call__.1
= control target key start
LH: loop header
LB: loop body
LE: loop exit
PB: predicated region body
PF: predicated region fallthrough
CT: control target
= control target key end

     0   :  { %s806_s18 = smov 0   ;;  %s808_s19 = smov 0   ;;  %s878_s0 = inlined_call_operand.vmem [shape: f32[2,4,256], index: 0, kind: input, shape index: {}]   ;;  %s879_s1 = inlined_call_operand.vmem [shape: f32[32,4], index: 1, kind: input, shape index: {}]   ;;  %s880_s2 = inlined_call_operand.vmem [shape: f32[32,1], index: 2, kind: input, shape index: {}]   ;;  %s881_s3 = inlined_call_operand.vmem [shape: f32[2,8,32], index: 3, kind: input, shape index: {}]   ;;  %s882_s4 = inlined_call_operand.vmem [shape: f32[2,8,4], index: 4, kind: input, shape index: {}]   ;;  %s883_s5 = inlined_call_operand.vmem [shape: f32[2,4,256], index: 5, kind: output, shape index: {}]  }
   0x1   :  { %s810_s20 = smov 0  }
   0x2 LB: > { %s27_s21 = sadd.s32 1, %s769_s19  ;;  %p688_p0 = scmp.ge.s32.totalorder %s773_s20, 1  ;;  %s773_s20 = sphi %s810_s20, %s15_s20   ;;  %s769_s19 = sphi %s808_s19, %s885_s19   ;;  %s765_s18 = sphi %s806_s18, %s884_s18  }
   0x3   : > { %p29_p1 = scmp.ge.s32.totalorder %s27_s21, 2  ;;  %p226_p2 = scmp.lt.s32.totalorder %s773_s20, 3 }
   0x5   : > { %s887_s21 = smov (%p29_p1, %s27_s21), 0  ;;  %p227_p3 = pnand %p688_p0, %p226_p2 }
   0x6   : > { %p271_p4 = scmp.lt.s32.totalorder (!%p227_p3), %s765_s18, 1 }
   0x7   : > { %230 = sbr.rel (%p227_p3) target bundleno = 482 (0x1e2), region = 40 }
   0xc   : > { %v304_v0 = vld [vmem:[%s880_s2 + $0x8] sm:$0xff]  ;;  %v775_v1 = vmov 0   ;;  %s889_s18 = smov (!%p271_p4, %s765_s18), 1  ;;  %v306_v2 = vld [vmem:[%s880_s2 + $0x18] sm:$0xff]  ;;  %v303_v4 = vld [vmem:[%s880_s2] sm:$0xff]  ;;  %vm346_vm0 = vcmask 1043456  }
   0xd   : > { %742 = vset.pattern.permute.xlu1 %v775_v1  ;;  %741 = vset.pattern.permute.xlu0 %v775_v1  ;;  %s830_s26 = sshll.u32 %s889_s18, 3  ;;  %v305_v5 = vld [vmem:[%s880_s2 + $0x10] sm:$0xff]  ;;  %v299_v6 = vld [vmem:[%s879_s1] sm:$0xff]  ;;  %vm333_vm1 = vcmask 31744   ;;  %v300_v9 = vld [vmem:[%s879_s1 + $0x8] sm:$0xff]  ;;  %vm409_vm2 = vcmask 261120  }
   0xe   : > { %316 = vperm.xlu1 %742, %v304_v0   ;;  %326 = vperm.xlu0 %741, %v306_v2   ;;  %s278_s29 = scalar_lea.vmem %s878_s0, %s830_s26  ;;  %v301_v10 = vld [vmem:[%s879_s1 + $0x10] sm:$0xff]  ;;  %v302_v11 = vld [vmem:[%s879_s1 + $0x18] sm:$0xff]  ;;  %s287_s22 = scalar_lea.vmem %s882_s4, %s830_s26  ;;  %vm523_vm10 = vcmask 64512  }
   0xf   : > { %v298_v3 = vld [vmem:[%s278_s29] sm:$0xff]  ;;  %s283_s25 = scalar_lea.vmem %s881_s3, %s830_s26  ;;  %s296_s29 = scalar_lea.vmem %s883_s5, %s830_s26 }
  0x10   : > { %330 = vst [vmem:[#allocation1] ss:$2 sm:$0xff] %v298_v3  ;;  %v308_v14 = vld [vmem:[%s287_s22] sm:$0xff] }
  0x11   : > { %491 = vxpose.xlu2.b32.start.end [1/1] (short) (narrow) %v308_v14, 8  ;;  %v307_v33 = vld [vmem:[%s283_s25] sm:$0xff] }
  0x16   : > { %311 = vperm.xlu1 %742, %v303_v4   ;;  %321 = vperm.xlu0 %741, %v305_v5  }
  0x17   : > { %v331_v7 = vld.sshfl [vmem:[#allocation1] sm:$0xff pattern:$0x75316420]  ;;  %v332_v8 = vld.sshfl [vmem:[#allocation1 + $0x8] sm:$0xff pattern:$0x75316420] }
  0x18   : > { %695 = vmatpush.msk.msra.mxu0 %vm346_vm0, %v331_v7  ;;  %700 = vmatpush.msk.msra.mxu1 %vm346_vm0, %v332_v8 }
  0x19   : > { %696 = vmatmul.msk.f32.vlgmr.msra.gmra.mxu0 %vm333_vm1, %v299_v6  ;;  %701 = vmatmul.msk.f32.vlgmr.msra.gmra.mxu1 %vm333_vm1, %v299_v6 }
  0x21   : > { %697 = vmatmul.msk.f32.gmra.mxu0 %vm333_vm1, %v300_v9  ;;  %702 = vmatmul.msk.f32.gmra.mxu1 %vm333_vm1, %v300_v9 }
  0x29   : > { %698 = vmatmul.msk.f32.gmra.mxu0 %vm333_vm1, %v301_v10  ;;  %703 = vmatmul.msk.f32.gmra.mxu1 %vm333_vm1, %v301_v10 }
  0x31   : > { %699 = vmatmul.msk.f32.gmra.mxu0 %vm333_vm1, %v302_v11  ;;  %704 = vmatmul.msk.f32.gmra.mxu1 %vm333_vm1, %v302_v11 }
  0x80   : > { %v327_v17 = vpop.permute.xlu0 %326  ;;  %v317_v20 = vpop.permute.xlu1 %316 }
  0x88   : > { %v322_v21 = vpop.permute.xlu0 %321  ;;  %v312_v28 = vpop.permute.xlu1 %311 }
  0x96   : > { %v368_v12 = vpop.f32.mrf.mxu0  ;;  %v397_v13 = vpop.f32.mrf.mxu1 }
  0x97   : > { %v369_v31 = vadd.f32 %v368_v12, %v312_v28  ;;  %v398_v32 = vadd.f32 %v397_v13, %v312_v28 }
  0x9e   : > { %v371_v15 = vpop.f32.mrf.mxu0  ;;  %v400_v16 = vpop.f32.mrf.mxu1 }
  0x9f   : > { %v372_v29 = vadd.f32 %v371_v15, %v317_v20  ;;  %v401_v30 = vadd.f32 %v400_v16, %v317_v20 }
  0xa6   : > { %v374_v18 = vpop.f32.mrf.mxu0  ;;  %v403_v19 = vpop.f32.mrf.mxu1 }
  0xa7   : > { %v375_v26 = vadd.f32 %v374_v18, %v322_v21  ;;  %v404_v27 = vadd.f32 %v403_v19, %v322_v21 }
  0xaa   : > { %v507_v59 = vpop.trf.xlu2 }
  0xae   : > { %v377_v22 = vpop.f32.mrf.mxu0  ;;  %v406_v23 = vpop.f32.mrf.mxu1 }
  0xaf   : > { %v378_v24 = vadd.f32 %v377_v22, %v327_v17  ;;  %v407_v25 = vadd.f32 %v406_v23, %v327_v17 }
  0xb1   : > { %425 = vmatpush.msra.mxu2 %v378_v24  ;;  %445 = vmatpush.msra.mxu3 %v407_v25 }
  0xb3   : > { %426 = vmatpush.msra.mxu2 %v375_v26  ;;  %446 = vmatpush.msra.mxu3 %v404_v27 }
  0xb5   : > { %427 = vmatpush.msra.mxu2 %v372_v29  ;;  %447 = vmatpush.msra.mxu3 %v401_v30 }
  0xb7   : > { %428 = vmatpush.msra.mxu2 %v369_v31  ;;  %448 = vmatpush.msra.mxu3 %v398_v32 }
  0xb8   : > { %705 = vmatmul.msk.f32.vlgmr.msra.gmra.mxu2 %vm409_vm2, %v307_v33  ;;  %706 = vmatmul.msk.f32.vlgmr.msra.gmra.mxu3 %vm409_vm2, %v307_v33 }
 0x13b   : > { %v430_v34 = vpop.f32.mrf.mxu2  ;;  %v450_v35 = vpop.f32.mrf.mxu3 }
 0x13c   : > { %v707_v36 = vmul.f32 -1.442695, %v430_v34  ;;  %v708_v37 = vmul.f32 -1.442695, %v450_v35 }
 0x13e   : > { %743 = vpow2.f32 %v707_v36 }
 0x13f   : > { %745 = vpow2.f32 %v708_v37 }
 0x144   : > { %v744_v38 = vpop.eup %743 }
 0x145   : > { %v746_v39 = vpop.eup %745  ;;  %v459_v40 = vadd.f32 1.0, %v744_v38 }
 0x146   : > { %v460_v41 = vadd.f32 1.0, %v746_v39 }
 0x147   : > { %747 = vrcp.f32 %v459_v40  ;;  %v472_v47 = vand.u32 2147483648, %v459_v40  ;;  %v470_v50 = vand.u32 2147483647, %v459_v40  ;;  %vm466_vm5 = vweird.f32 %v459_v40 }
 0x148   : > { %749 = vrcp.f32 %v460_v41  ;;  %v487_v51 = vand.u32 2147483648, %v460_v41  ;;  %v485_v53 = vand.u32 2147483647, %v460_v41  ;;  %vm481_vm7 = vweird.f32 %v460_v41 }
 0x149   : > { %v473_v55 = vor.u32 1.1754944e-38, %v472_v47  ;;  %vm471_vm8 = vcmp.eq.f32.partialorder %v470_v50, 8.507059e+37 }
 0x14a   : > { %v488_v58 = vor.u32 1.1754944e-38, %v487_v51  ;;  %vm486_vm11 = vcmp.eq.f32.partialorder %v485_v53, 8.507059e+37 }
 0x14d   : > { %v748_v42 = vpop.eup %747 }
 0x14e   : > { %v750_v43 = vpop.eup %749  ;;  %v462_v44 = vmul.f32 %v748_v42, %v459_v40  ;;  %vm467_vm3 = vweird.f32 %v748_v42 }
 0x14f   : > { %v477_v45 = vmul.f32 %v750_v43, %v460_v41  ;;  %vm482_vm4 = vweird.f32 %v750_v43  ;;  %vm468_vm6 = vmor %vm466_vm5, %vm467_vm3 }
 0x150   : > { %v463_v46 = vsub.f32 1.0, %v462_v44  ;;  %vm483_vm9 = vmor %vm481_vm7, %vm482_vm4 }
 0x151   : > { %v478_v48 = vsub.f32 1.0, %v477_v45 }
 0x152   : > { %v464_v49 = vmul.f32 %v748_v42, %v463_v46 }
 0x153   : > { %v479_v52 = vmul.f32 %v750_v43, %v478_v48 }
 0x154   : > { %v465_v54 = vadd.f32 %v748_v42, %v464_v49 }
 0x155   : > { %v480_v56 = vadd.f32 %v750_v43, %v479_v52 }
 0x156   : > { %v469_v57 = vsel %vm468_vm6, %v748_v42, %v465_v54 }
 0x157   : > { %v474_v60 = vsel %vm471_vm8, %v473_v55, %v469_v57  ;;  %v484_v61 = vsel %vm483_vm9, %v750_v43, %v480_v56 }
 0x158   : > { %542 = vmatpush.msrb.mxu2 %v474_v60  ;;  %v489_v62 = vsel %vm486_vm11, %v488_v58, %v484_v61 }
 0x159   : > { %562 = vmatpush.msrb.mxu3 %v489_v62  ;;  %709 = vmatmul.msk.f32.vlgmr.msrb.gmra.mxu2 %vm523_vm10, %v507_v59 }
 0x15a   : > { %710 = vmatmul.msk.f32.vlgmr.msrb.gmra.mxu3 %vm523_vm10, %v507_v59 }
 0x1dc   : > { %v544_v1 = vpop.f32.mrf.mxu2 }
 0x1dd   : > { %v564_v63 = vpop.f32.mrf.mxu3 }
 0x1de   : > { %v569_v0 = vrot.slane %v564_v63, 4 }
 0x1e0   : > { %v570_v2 = vsel %vm346_vm0, %v544_v1, %v569_v0 }
 0x1e1   : > { %572 = vst [vmem:[%s296_s29] sm:$0xff] %v570_v2 }
 0x1e2 PF: > { %s15_s20 = sadd.s32 1, %s773_s20   ;;  %s884_s18 = smov %s769_s19 }
 0x1e3   : > { %p12_p5 = scmp.ge.s32.totalorder %s15_s20, 4   ;;  %s885_s19 = smov %s887_s21 }
 0x1e5   :  { %14 = sbr.rel (!%p12_p5) target bundleno = 2 (0x2), region = 76 }

</bundles_post_ra>
